<compile_context>
chip_gen: v7x
topology: tpu7x:2x2x1
jax: 0.10.0
libtpu: 0.0.40
codegen_flags: <defaults>
</compile_context>

<pallas_src>
import functools

import jax
import jax.numpy as jnp
from jax.experimental import pallas as pl
from jax.experimental.pallas import tpu as pltpu


# ----------------------------------------------------------------------------
# Kernel bodies
# ----------------------------------------------------------------------------

def _decomp_math(counts, x, inv_k, out_dtype):
    """counts: (L, L) integer window counts; x: (L, T).  Returns (mean, res)."""
    xm = x if x.dtype == counts.dtype else x.astype(counts.dtype)
    acc = jnp.dot(counts, xm, preferred_element_type=jnp.float32)   # MXU, f32 acc
    mean = (acc * inv_k).astype(out_dtype)                          # scalar 1/k epilogue
    res = (x - mean.astype(x.dtype)).astype(out_dtype)              # subtract rounded mean
    return mean, res


def _decomp_kernel_2d(a_ref, x_ref, res_ref, mean_ref, *, inv_k):
    """Blocks: a_ref (L, L); x/res/mean (L, TN) with lane axis = flattened B*C."""
    mean, res = _decomp_math(a_ref[...], x_ref[...], inv_k, mean_ref.dtype)
    mean_ref[...] = mean
    res_ref[...] = res


def _decomp_kernel_3d(a_ref, x_ref, res_ref, mean_ref, *, inv_k):
    """Blocks: a_ref (L, L); x/res/mean (1, L, TC) — one batch row per block."""
    mean, res = _decomp_math(a_ref[...], x_ref[0], inv_k, mean_ref.dtype)
    mean_ref[0] = mean
    res_ref[0] = res


# ----------------------------------------------------------------------------
# Averaging matrix (integer window counts) and tiling helpers
# ----------------------------------------------------------------------------

def _window_counts(L, kernel_size, dtype):
    """(L, L) matrix of window counts so that (counts @ x) / kernel_size equals
    the edge-replicated stride-1 moving average along L."""
    pad = (kernel_size - 1) // 2
    i = jnp.arange(L)[:, None]     # output row index
    j = jnp.arange(L)[None, :]     # input row index
    w = ((j >= i - pad) & (j <= i + pad)).astype(jnp.float32)
    # Window positions falling before row 0 / after row L-1 read the edge rows.
    front = jnp.maximum(0, pad - i[:, 0]).astype(jnp.float32)
    end = jnp.maximum(0, i[:, 0] + pad - (L - 1)).astype(jnp.float32)
    w = w.at[:, 0].add(front)
    w = w.at[:, L - 1].add(end)
    return w.astype(dtype)         # integer-valued; exact in bf16 for kernel_size <= 256


def _vmem_capacity_bytes():
    try:
        return int(pltpu.get_tpu_info().vmem_capacity_bytes)
    except Exception:              # interpret mode / older jax: assume v7x-sized VMEM
        return 64 << 20


def _choose_lane_tile(W, L, itemsize, target_bytes):
    """Last-dim tile: a multiple of 128 (or the full dim) sized against
    target_bytes, clamped so the lane grid axis has >= 2 steps when possible."""
    if W <= 128:
        return int(W)                                  # full-dim block (always legal)
    t = (target_bytes // max(L * itemsize, 1)) // 128 * 128
    t = max(128, min(t, (W // 128) * 128))
    if W >= 256:                                       # keep >= 2 grid steps (v7x: 2 TCs)
        t = min(t, max(128, (W // 2) // 128 * 128))
    return int(t)


def _working_set_bytes(L, t, itemsize, a_itemsize):
    a_bytes = 2 * L * L * a_itemsize          # counts (conservatively double-buffered)
    io_bytes = 2 * 3 * L * t * itemsize       # double-buffered x + res + mean blocks
    tmp_bytes = 3 * L * t * 4                 # f32 accumulator / cast temporaries
    return a_bytes + io_bytes + tmp_bytes


# ----------------------------------------------------------------------------
# pallas_call builders
# ----------------------------------------------------------------------------

def _counts_spec(index_map, single_buffer, L):
    if single_buffer:
        return pl.BlockSpec((L, L), index_map, pipeline_mode=pl.Buffered(1))
    return pl.BlockSpec((L, L), index_map)


def _run_2d(counts, x2, tn, inv_k, vmem_limit, single_buffer_a):
    L, N = x2.shape
    out_sds = jax.ShapeDtypeStruct((L, N), x2.dtype)
    data_spec = lambda: pl.BlockSpec((L, tn), lambda ni: (0, ni))
    return pl.pallas_call(
        functools.partial(_decomp_kernel_2d, inv_k=inv_k),
        out_shape=(out_sds, out_sds),
        grid_spec=pltpu.PrefetchScalarGridSpec(
            num_scalar_prefetch=0,
            grid=(pl.cdiv(N, tn),),
            in_specs=[_counts_spec(lambda ni: (0, 0), single_buffer_a, L),
                      data_spec()],
            out_specs=(data_spec(), data_spec()),
        ),
        compiler_params=pltpu.CompilerParams(
            dimension_semantics=("parallel",),
            vmem_limit_bytes=vmem_limit,
        ),
    )(counts, x2)


def _run_3d(counts, x, tc, inv_k, vmem_limit, single_buffer_a):
    B, L, C = x.shape
    out_sds = jax.ShapeDtypeStruct((B, L, C), x.dtype)
    data_spec = lambda: pl.BlockSpec((1, L, tc), lambda b, ci: (b, 0, ci))
    return pl.pallas_call(
        functools.partial(_decomp_kernel_3d, inv_k=inv_k),
        out_shape=(out_sds, out_sds),
        grid_spec=pltpu.PrefetchScalarGridSpec(
            num_scalar_prefetch=0,
            grid=(B, pl.cdiv(C, tc)),
            in_specs=[_counts_spec(lambda b, ci: (0, 0), single_buffer_a, L),
                      data_spec()],
            out_specs=(data_spec(), data_spec()),
        ),
        compiler_params=pltpu.CompilerParams(
            dimension_semantics=("parallel", "parallel"),
            vmem_limit_bytes=vmem_limit,
        ),
    )(counts, x)


# ----------------------------------------------------------------------------
# Public wrapper
# ----------------------------------------------------------------------------

def series_decomp(x: jax.Array, kernel_size: int):
    """Returns (res, moving_mean), both (B, L, C) in x.dtype."""
    assert kernel_size % 2 == 1, "odd kernel_size required so res = x - mean is well-formed"
    B, L, C = x.shape
    itemsize = jnp.dtype(x.dtype).itemsize
    inv_k = 1.0 / float(kernel_size)

    # Native 16-bit MXU path: window counts are small integers (exact in bf16/f16);
    # scale by 1/k AFTER the f32-accumulated dot.  f32 inputs keep a full-f32 matmul.
    if jnp.issubdtype(x.dtype, jnp.floating) and itemsize == 2 and kernel_size <= 256:
        mm_dtype = x.dtype
    else:
        mm_dtype = jnp.float32
    counts = _window_counts(L, kernel_size, mm_dtype)
    a_itemsize = jnp.dtype(mm_dtype).itemsize

    cap = _vmem_capacity_bytes()
    budget = min(int(0.80 * cap), 112 << 20)           # ~51 MiB on v7x, ~102 MiB on v5e/v6e
    target_bytes = (2 << 20) if cap <= (64 << 20) else (6 << 20)

    if 2 * L * L * a_itemsize > budget:
        # TODO(synk): L-tiled banded-A kernel (halo'd x blocks) for very long sequences.
        raise NotImplementedError(
            f"series_decomp: dense ({L},{L}) averaging matrix exceeds the VMEM budget; "
            "a banded L-tiled kernel is required for this sequence length.")

    use_2d = C < 128                 # lane-sparse channels: repack to a (L, B*C) slab
    W = B * C if use_2d else C
    t = _choose_lane_tile(W, L, itemsize, target_bytes)
    while t > 128 and _working_set_bytes(L, t, itemsize, a_itemsize) > budget:
        t = max(128, t - 128)
    need = _working_set_bytes(L, t, itemsize, a_itemsize)
    vmem_limit = int(min(max(need * 3 // 2, 32 << 20), int(0.9 * cap)))

    if use_2d:
        # Layout plumbing only: lane axis becomes B*C so stores are as lane-dense
        # as the problem allows and the MXU N dimension is wide.
        x2 = jnp.transpose(x, (1, 0, 2)).reshape(L, W)
        try:
            res2, mean2 = _run_2d(counts, x2, t, inv_k, vmem_limit, single_buffer_a=True)
        except Exception:
            res2, mean2 = _run_2d(counts, x2, t, inv_k, vmem_limit, single_buffer_a=False)
        res = jnp.transpose(res2.reshape(L, B, C), (1, 0, 2))
        mean = jnp.transpose(mean2.reshape(L, B, C), (1, 0, 2))
    else:
        try:
            res, mean = _run_3d(counts, x, t, inv_k, vmem_limit, single_buffer_a=True)
        except Exception:
            res, mean = _run_3d(counts, x, t, inv_k, vmem_limit, single_buffer_a=False)
    return res, mean


# ----------------------------------------------------------------------------
# Pure-JAX reference mirroring the PyTorch semantics
# ----------------------------------------------------------------------------

def _series_decomp_ref(x: jax.Array, kernel_size: int):
    pad = (kernel_size - 1) // 2
    front = jnp.repeat(x[:, 0:1, :], pad, axis=1)
    end = jnp.repeat(x[:, -1:, :], pad, axis=1)
    xp = jnp.concatenate([front, x, end], axis=1)          # (B, L+2p, C)
    windows = jnp.stack(
        [xp[:, j:j + x.shape[1], :] for j in range(kernel_size)], axis=0)
    mean = jnp.mean(windows.astype(jnp.float32), axis=0).astype(x.dtype)
    return x - mean, mean


if __name__ == "__main__":
    KERNEL_SIZE = 5

    # Small-C (repacked lane-dense) f32 path.
    B, L, C = 2, 8, 32
    key = jax.random.PRNGKey(0)
    x = jax.random.normal(key, (B, L, C), dtype=jnp.float32)

    res, mean = series_decomp(x, KERNEL_SIZE)
    jax.block_until_ready((res, mean))

    res_ref, mean_ref = _series_decomp_ref(x, KERNEL_SIZE)
    assert jnp.allclose(mean, mean_ref, atol=1e-5, rtol=1e-5)
    assert jnp.allclose(res, res_ref, atol=1e-5, rtol=1e-5)

    # Lane-dense 3-D path + native bf16 MXU path.
    xb = jax.random.normal(jax.random.PRNGKey(1), (2, 8, 128), dtype=jnp.bfloat16)
    res_b, mean_b = series_decomp(xb, KERNEL_SIZE)
    jax.block_until_ready((res_b, mean_b))
    res_bref, mean_bref = _series_decomp_ref(xb, KERNEL_SIZE)
    assert jnp.allclose(mean_b.astype(jnp.float32), mean_bref.astype(jnp.float32), atol=3e-2)
    assert jnp.allclose(res_b.astype(jnp.float32), res_bref.astype(jnp.float32), atol=3e-2)

    print("KERNEL_OK")
</pallas_src>

<mosaic_0001>
module attributes {stable_mosaic.version = 11 : i64} {
  func.func @_decomp_kernel_2d(%arg0: i32, %arg1: memref<8x8xf32, #tpu.memory_space<vmem>>, %arg2: memref<8x64xf32, #tpu.memory_space<vmem>>, %arg3: memref<8x64xf32, #tpu.memory_space<vmem>>, %arg4: memref<8x64xf32, #tpu.memory_space<vmem>>) attributes {dimension_semantics = [#tpu.dimension_semantics<parallel>], iteration_bounds = array<i64: 1>, scalar_prefetch = 0 : i64, scratch_operands = 0 : i64, tpu.core_type = #tpu.core_type<tc>, window_params = [{pipeline_mode = #tpu.pipeline_mode<synchronous>, transform_indices = @transform_0, window_bounds = array<i64: 8, 8>}, {transform_indices = @transform_1, window_bounds = array<i64: 8, 64>}, {transform_indices = @transform_2, window_bounds = array<i64: 8, 64>}, {transform_indices = @transform_3, window_bounds = array<i64: 8, 64>}]} {
    %c0 = arith.constant 0 : index
    %c0_0 = arith.constant 0 : index
    %0 = vector.load %arg1[%c0, %c0_0] : memref<8x8xf32, #tpu.memory_space<vmem>>, vector<8x8xf32>
    %c0_1 = arith.constant 0 : index
    %c0_2 = arith.constant 0 : index
    %1 = vector.load %arg2[%c0_1, %c0_2] : memref<8x64xf32, #tpu.memory_space<vmem>>, vector<8x64xf32>
    %cst = arith.constant dense<0.000000e+00> : vector<8x64xf32>
    %2 = tpu.matmul %0, %1, %cst {dimension_numbers = #tpu.dot_dimension_numbers<[1], [0], [0], [1], [0, 0, 1, 1], [], []>} : vector<8x8xf32>, vector<8x64xf32>, vector<8x64xf32> -> vector<8x64xf32>
    %cst_3 = arith.constant 2.000000e-01 : f32
    %3 = vector.broadcast %cst_3 : f32 to vector<8x64xf32>
    %4 = arith.mulf %2, %3 : vector<8x64xf32>
    %5 = arith.subf %1, %4 : vector<8x64xf32>
    %c0_4 = arith.constant 0 : index
    %c0_5 = arith.constant 0 : index
    %6 = vector.load %arg4[%c0_4, %c0_5] : memref<8x64xf32, #tpu.memory_space<vmem>>, vector<8x64xf32>
    tpu.vector_store %arg4[%c0_4, %c0_5], %4 {strides = array<i32>} : memref<8x64xf32, #tpu.memory_space<vmem>>, vector<8x64xf32>,
    %c0_6 = arith.constant 0 : index
    %c0_7 = arith.constant 0 : index
    %7 = vector.load %arg3[%c0_6, %c0_7] : memref<8x64xf32, #tpu.memory_space<vmem>>, vector<8x64xf32>
    tpu.vector_store %arg3[%c0_6, %c0_7], %5 {strides = array<i32>} : memref<8x64xf32, #tpu.memory_space<vmem>>, vector<8x64xf32>,
    return
  }
  func.func @transform_0(%arg0: i32) -> (i32, i32) {
    %c0_i32 = arith.constant 0 : i32
    %c0_i32_0 = arith.constant 0 : i32
    %c0_i32_1 = arith.constant 0 : i32
    return %c0_i32, %c0_i32_0 : i32, i32
  }
  func.func @transform_1(%arg0: i32) -> (i32, i32) {
    %c0_i32 = arith.constant 0 : i32
    %c0_i32_0 = arith.constant 0 : i32
    return %c0_i32, %arg0 : i32, i32
  }
  func.func @transform_2(%arg0: i32) -> (i32, i32) {
    %c0_i32 = arith.constant 0 : i32
    %c0_i32_0 = arith.constant 0 : i32
    return %c0_i32, %arg0 : i32, i32
  }
  func.func @transform_3(%arg0: i32) -> (i32, i32) {
    %c0_i32 = arith.constant 0 : i32
    %c0_i32_0 = arith.constant 0 : i32
    return %c0_i32, %arg0 : i32, i32
  }
}

module attributes {stable_mosaic.version = 11 : i64} {
  func.func @_decomp_kernel_2d(%arg0: i32, %arg1: memref<8x8xf32, #tpu.memory_space<vmem>>, %arg2: memref<8x64xf32, #tpu.memory_space<vmem>>, %arg3: memref<8x64xf32, #tpu.memory_space<vmem>>, %arg4: memref<8x64xf32, #tpu.memory_space<vmem>>) attributes {dimension_semantics = [#tpu.dimension_semantics<parallel>], iteration_bounds = array<i64: 1>, scalar_prefetch = 0 : i64, scratch_operands = 0 : i64, tpu.core_type = #tpu.core_type<tc>, window_params = [{pipeline_mode = #tpu.pipeline_mode<synchronous>, transform_indices = @transform_0, window_bounds = array<i64: 8, 8>}, {transform_indices = @transform_1, window_bounds = array<i64: 8, 64>}, {transform_indices = @transform_2, window_bounds = array<i64: 8, 64>}, {transform_indices = @transform_3, window_bounds = array<i64: 8, 64>}]} {
    %c0 = arith.constant 0 : index
    %c0_0 = arith.constant 0 : index
    %0 = vector.load %arg1[%c0, %c0_0] : memref<8x8xf32, #tpu.memory_space<vmem>>, vector<8x8xf32>
    %c0_1 = arith.constant 0 : index
    %c0_2 = arith.constant 0 : index
    %1 = vector.load %arg2[%c0_1, %c0_2] : memref<8x64xf32, #tpu.memory_space<vmem>>, vector<8x64xf32>
    %cst = arith.constant dense<0.000000e+00> : vector<8x64xf32>
    %2 = tpu.matmul %0, %1, %cst {dimension_numbers = #tpu.dot_dimension_numbers<[1], [0], [0], [1], [0, 0, 1, 1], [], []>} : vector<8x8xf32>, vector<8x64xf32>, vector<8x64xf32> -> vector<8x64xf32>
    %cst_3 = arith.constant 2.000000e-01 : f32
    %3 = vector.broadcast %cst_3 : f32 to vector<8x64xf32>
    %4 = arith.mulf %2, %3 : vector<8x64xf32>
    %5 = arith.subf %1, %4 : vector<8x64xf32>
    %c0_4 = arith.constant 0 : index
    %c0_5 = arith.constant 0 : index
    %6 = vector.load %arg4[%c0_4, %c0_5] : memref<8x64xf32, #tpu.memory_space<vmem>>, vector<8x64xf32>
    tpu.vector_store %arg4[%c0_4, %c0_5], %4 {strides = array<i32>} : memref<8x64xf32, #tpu.memory_space<vmem>>, vector<8x64xf32>,
    %c0_6 = arith.constant 0 : index
    %c0_7 = arith.constant 0 : index
    %7 = vector.load %arg3[%c0_6, %c0_7] : memref<8x64xf32, #tpu.memory_space<vmem>>, vector<8x64xf32>
    tpu.vector_store %arg3[%c0_6, %c0_7], %5 {strides = array<i32>} : memref<8x64xf32, #tpu.memory_space<vmem>>, vector<8x64xf32>,
    return
  }
  func.func @transform_0(%arg0: i32) -> (i32, i32) {
    %c0_i32 = arith.constant 0 : i32
    %c0_i32_0 = arith.constant 0 : i32
    %c0_i32_1 = arith.constant 0 : i32
    return %c0_i32, %c0_i32_0 : i32, i32
  }
  func.func @transform_1(%arg0: i32) -> (i32, i32) {
    %c0_i32 = arith.constant 0 : i32
    %c0_i32_0 = arith.constant 0 : i32
    return %c0_i32, %arg0 : i32, i32
  }
  func.func @transform_2(%arg0: i32) -> (i32, i32) {
    %c0_i32 = arith.constant 0 : i32
    %c0_i32_0 = arith.constant 0 : i32
    return %c0_i32, %arg0 : i32, i32
  }
  func.func @transform_3(%arg0: i32) -> (i32, i32) {
    %c0_i32 = arith.constant 0 : i32
    %c0_i32_0 = arith.constant 0 : i32
    return %c0_i32, %arg0 : i32, i32
  }
}

</mosaic_0001>

<bundles_post_ra>
// kernel: tpu_custom_call.1
= control target key start
LH: loop header
LB: loop body
LE: loop exit
PB: predicated region body
PF: predicated region fallthrough
CT: control target
= control target key end

     0   :  { %9 = vsyncpa [#allocation3], 0  ;;  %s336_s0 = inlined_call_operand.hbm [shape: f32[8,8], index: 0, kind: input, shape index: {}]   ;;  %s337_s1 = inlined_call_operand.hbm [shape: f32[8,64], index: 1, kind: input, shape index: {}]   ;;  %s338_s2 = inlined_call_operand.hbm [shape: f32[8,64], index: 2, kind: output, shape index: {0}]   ;;  %s339_s3 = inlined_call_operand.hbm [shape: f32[8,64], index: 3, kind: output, shape index: {1}]  }
   0x1   :  { %10 = vsyncpa [#allocation6], 0 }
   0x2   :  { %11 = vsyncpa [#allocation4], 0 }
   0x3   :  { %12 = vsyncpa [#allocation9], 0  ;;  %s260_s12 = smov [#allocation2]   ;;  %s261_s14 = smov [#allocation5]  }
   0x4   :  { %s19_s13 = sshll.u32 %s260_s12, 4  ;;  %s29_s15 = sshll.u32 %s261_s14, 4  ;;  %s20_s13 = int_to_ptr.vmem [resolvable:$true] %s19_s13  ;;  %s30_s15 = int_to_ptr.vmem [resolvable:$true] %s29_s15 }
   0x5   :  { %s164_s18 = scalar_lea.hbm %s336_s0, 128 }
   0x6   :  { %p165_p0 = scmp.ne.s32.totalorder %s336_s0, %s164_s18  ;;  %p168_p1 = scmp.lt.u32.totalorder %s164_s18, %s336_s0 }
   0x8   :  { %p170_p2 = pnand %p168_p1, %p165_p0 }
   0xa   :  { %173 = shalt.err (!%p170_p2)
}
   0xb   :  { %s174_s23 = scalar_lea.vmem %s20_s13, 128  ;;  %p179_p4 = scmp.lt.s32.totalorder %s20_s13, %s20_s13 }
   0xc   :  { %p175_p3 = scmp.ne.s32.totalorder %s20_s13, %s174_s23  ;;  %p180_p5 = scmp.lt.s32.totalorder %s174_s23, %s174_s23 }
   0xe   :  { %p181_p6 = por %p180_p5, %p179_p4 }
  0x10   :  { %p182_p7 = pnand %p181_p6, %p175_p3 }
  0x12   :  { %185 = shalt.err (!%p182_p7)
}
  0x13   :  { %22 = dma.hbm_to_vmem [thread:$0]  %s336_s0, 128, %s20_s13, [#allocation3]  }
  0x14   :  { %s186_s28 = scalar_lea.hbm %s337_s1, 128 }
  0x15   :  { %p187_p8 = scmp.ne.s32.totalorder %s337_s1, %s186_s28  ;;  %p190_p9 = scmp.lt.u32.totalorder %s186_s28, %s337_s1 }
  0x17   :  { %p192_p10 = pnand %p190_p9, %p187_p8 }
  0x19   :  { %195 = shalt.err (!%p192_p10)
}
  0x1a   :  { %s196_s6 = scalar_lea.vmem %s30_s15, 128  ;;  %p201_p12 = scmp.lt.s32.totalorder %s30_s15, %s30_s15 }
  0x1b   :  { %p197_p11 = scmp.ne.s32.totalorder %s30_s15, %s196_s6  ;;  %p202_p13 = scmp.lt.s32.totalorder %s196_s6, %s196_s6 }
  0x1d   :  { %p203_p0 = por %p202_p13, %p201_p12 }
  0x1f   :  { %p204_p1 = pnand %p203_p0, %p197_p11 }
  0x21   :  { %207 = shalt.err (!%p204_p1)
}
  0x22   :  { %32 = dma.hbm_to_vmem [thread:$0]  %s337_s1, 128, %s30_s15, [#allocation6]  }
  0x23   :  { %252 = dma.done.wait [#allocation3], 128  }
  0x24   :  { %253 = vsyncadd [#allocation3], 4294967168 }
  0x25   :  { %254 = dma.done.wait [#allocation6], 128  }
  0x26   :  { %255 = vsyncadd [#allocation6], 4294967168  ;;  %v262_v0 = vmov 0.0   ;;  %vm263_vm0 = vmmov 0   ;;  %vm41_vm1 = vcmask 64512   ;;  %v40_v1 = vld [vmem:[#allocation5] sm:$0xff] }
  0x27   :  { %153 = vmatprep.subr.mxu0 %v262_v0  ;;  %155 = vmatprep.mubr.msk.f32.mxu0 %vm263_vm0, %v262_v0  ;;  %v39_v2 = vld [vmem:[#allocation2] sm:$0xff]  ;;  %s264_s8 = smov [#allocation8]   ;;  %vm117_vm2 = vcmask 523264   ;;  %s265_s10 = smov [#allocation7]  }
  0x28   :  { %154 = vmatpush3.msra.mxu0 %v40_v1  ;;  %s136_s9 = sshll.u32 %s264_s8, 4  ;;  %s126_s11 = sshll.u32 %s265_s10, 4  ;;  %s137_s9 = int_to_ptr.vmem [resolvable:$true] %s136_s9  ;;  %s127_s11 = int_to_ptr.vmem [resolvable:$true] %s126_s11 }
  0x29   :  { %156 = vmatmul.mubr.msk.f32.vlgmr.msra.gmra.mrb[0].mxu0 %vm41_vm1, %v39_v2  ;;  %s208_s1 = scalar_lea.vmem %s137_s9, 128  ;;  %p213_p3 = scmp.lt.s32.totalorder %s137_s9, %s137_s9 }
  0x2a   :  { %p209_p2 = scmp.ne.s32.totalorder %s137_s9, %s208_s1  ;;  %p214_p4 = scmp.lt.s32.totalorder %s208_s1, %s208_s1 }
  0x2c   :  { %p215_p5 = por %p214_p4, %p213_p3 }
  0x2e   :  { %p216_p6 = pnand %p215_p5, %p209_p2 }
  0xfc   :  { %v111_v3 = vpop.f32.mrb[0].mxu0 }
  0xfd   :  { %v115_v4 = vmul.f32 0.2, %v111_v3  ;;  %v157_v5 = vpop.f32.mrb[1].mxu0 }
  0xff   :  { %v116_v6 = vsub.f32 %v40_v1, %v115_v4  ;;  %118 = vst.msk [vmem:[#allocation8] sm:$0xff] %vm117_vm2, %v115_v4 }
 0x100   :  { %219 = shalt.err (!%p216_p6)
}
 0x101   :  { %s220_s14 = scalar_lea.hbm %s339_s3, 128 }
 0x102   :  { %p221_p7 = scmp.ne.s32.totalorder %s339_s3, %s220_s14  ;;  %p224_p8 = scmp.lt.u32.totalorder %s220_s14, %s339_s3 }
 0x104   :  { %p226_p9 = pnand %p224_p8, %p221_p7 }
 0x106   :  { %229 = shalt.err (!%p226_p9)
}
 0x107   :  { %139 = dma.vmem_to_hbm [thread:$0]  %s137_s9, 128, %s339_s3, [#allocation9]   ;;  %119 = vst.msk [vmem:[#allocation7] sm:$0xff] %vm117_vm2, %v116_v6 }
 0x108   :  { %s230_s21 = scalar_lea.vmem %s127_s11, 128  ;;  %p235_p11 = scmp.lt.s32.totalorder %s127_s11, %s127_s11 }
 0x109   :  { %p231_p10 = scmp.ne.s32.totalorder %s127_s11, %s230_s21  ;;  %p236_p12 = scmp.lt.s32.totalorder %s230_s21, %s230_s21 }
 0x10b   :  { %p237_p13 = por %p236_p12, %p235_p11 }
 0x10d   :  { %p238_p0 = pnand %p237_p13, %p231_p10 }
 0x10f   :  { %241 = shalt.err (!%p238_p0)
}
 0x110   :  { %s242_s24 = scalar_lea.hbm %s338_s2, 128 }
 0x111   :  { %p243_p1 = scmp.ne.s32.totalorder %s338_s2, %s242_s24  ;;  %p246_p2 = scmp.lt.u32.totalorder %s242_s24, %s338_s2 }
 0x113   :  { %p248_p3 = pnand %p246_p2, %p243_p1 }
 0x115   :  { %251 = shalt.err (!%p248_p3)
}
 0x116   :  { %129 = dma.vmem_to_hbm [thread:$0]  %s127_s11, 128, %s338_s2, [#allocation4]  }
 0x117   :  { %256 = dma.done.wait [#allocation4], 128  }
 0x118   :  { %257 = vsyncadd [#allocation4], 4294967168 }
 0x119   :  { %258 = dma.done.wait [#allocation9], 128  }
 0x11a   :  { %259 = vsyncadd [#allocation9], 4294967168 }
 0x11b   :  { %146 = vsyncpa [#allocation3], 1 }
 0x11c   :  { %147 = vsyncpa [#allocation6], 1 }
 0x11d   :  { %148 = vsyncpa [#allocation4], 1 }
 0x11e   :  { %149 = vsyncpa [#allocation9], 1 }

// kernel: tpu_custom_call.1
= control target key start
LH: loop header
LB: loop body
LE: loop exit
PB: predicated region body
PF: predicated region fallthrough
CT: control target
= control target key end

     0   :  { %9 = vsyncpa [#allocation3], 0  ;;  %s336_s0 = inlined_call_operand.hbm [shape: f32[8,8], index: 0, kind: input, shape index: {}]   ;;  %s337_s1 = inlined_call_operand.hbm [shape: f32[8,64], index: 1, kind: input, shape index: {}]   ;;  %s338_s2 = inlined_call_operand.hbm [shape: f32[8,64], index: 2, kind: output, shape index: {0}]   ;;  %s339_s3 = inlined_call_operand.hbm [shape: f32[8,64], index: 3, kind: output, shape index: {1}]  }
   0x1   :  { %10 = vsyncpa [#allocation6], 0 }
   0x2   :  { %11 = vsyncpa [#allocation4], 0 }
   0x3   :  { %12 = vsyncpa [#allocation9], 0  ;;  %s260_s12 = smov [#allocation2]   ;;  %s261_s14 = smov [#allocation5]  }
   0x4   :  { %s19_s13 = sshll.u32 %s260_s12, 4  ;;  %s29_s15 = sshll.u32 %s261_s14, 4  ;;  %s20_s13 = int_to_ptr.vmem [resolvable:$true] %s19_s13  ;;  %s30_s15 = int_to_ptr.vmem [resolvable:$true] %s29_s15 }
   0x5   :  { %s164_s18 = scalar_lea.hbm %s336_s0, 128 }
   0x6   :  { %p165_p0 = scmp.ne.s32.totalorder %s336_s0, %s164_s18  ;;  %p168_p1 = scmp.lt.u32.totalorder %s164_s18, %s336_s0 }
   0x8   :  { %p170_p2 = pnand %p168_p1, %p165_p0 }
   0xa   :  { %173 = shalt.err (!%p170_p2)
}
   0xb   :  { %s174_s23 = scalar_lea.vmem %s20_s13, 128  ;;  %p179_p4 = scmp.lt.s32.totalorder %s20_s13, %s20_s13 }
   0xc   :  { %p175_p3 = scmp.ne.s32.totalorder %s20_s13, %s174_s23  ;;  %p180_p5 = scmp.lt.s32.totalorder %s174_s23, %s174_s23 }
   0xe   :  { %p181_p6 = por %p180_p5, %p179_p4 }
  0x10   :  { %p182_p7 = pnand %p181_p6, %p175_p3 }
  0x12   :  { %185 = shalt.err (!%p182_p7)
}
  0x13   :  { %22 = dma.hbm_to_vmem [thread:$0]  %s336_s0, 128, %s20_s13, [#allocation3]  }
  0x14   :  { %s186_s28 = scalar_lea.hbm %s337_s1, 128 }
  0x15   :  { %p187_p8 = scmp.ne.s32.totalorder %s337_s1, %s186_s28  ;;  %p190_p9 = scmp.lt.u32.totalorder %s186_s28, %s337_s1 }
  0x17   :  { %p192_p10 = pnand %p190_p9, %p187_p8 }
  0x19   :  { %195 = shalt.err (!%p192_p10)
}
  0x1a   :  { %s196_s6 = scalar_lea.vmem %s30_s15, 128  ;;  %p201_p12 = scmp.lt.s32.totalorder %s30_s15, %s30_s15 }
  0x1b   :  { %p197_p11 = scmp.ne.s32.totalorder %s30_s15, %s196_s6  ;;  %p202_p13 = scmp.lt.s32.totalorder %s196_s6, %s196_s6 }
  0x1d   :  { %p203_p0 = por %p202_p13, %p201_p12 }
  0x1f   :  { %p204_p1 = pnand %p203_p0, %p197_p11 }
  0x21   :  { %207 = shalt.err (!%p204_p1)
}
  0x22   :  { %32 = dma.hbm_to_vmem [thread:$0]  %s337_s1, 128, %s30_s15, [#allocation6]  }
  0x23   :  { %252 = dma.done.wait [#allocation3], 128  }
  0x24   :  { %253 = vsyncadd [#allocation3], 4294967168 }
  0x25   :  { %254 = dma.done.wait [#allocation6], 128  }
  0x26   :  { %255 = vsyncadd [#allocation6], 4294967168  ;;  %v262_v0 = vmov 0.0   ;;  %vm263_vm0 = vmmov 0   ;;  %vm41_vm1 = vcmask 64512   ;;  %v40_v1 = vld [vmem:[#allocation5] sm:$0xff] }
  0x27   :  { %153 = vmatprep.subr.mxu0 %v262_v0  ;;  %155 = vmatprep.mubr.msk.f32.mxu0 %vm263_vm0, %v262_v0  ;;  %v39_v2 = vld [vmem:[#allocation2] sm:$0xff]  ;;  %s264_s8 = smov [#allocation8]   ;;  %vm117_vm2 = vcmask 523264   ;;  %s265_s10 = smov [#allocation7]  }
  0x28   :  { %154 = vmatpush3.msra.mxu0 %v40_v1  ;;  %s136_s9 = sshll.u32 %s264_s8, 4  ;;  %s126_s11 = sshll.u32 %s265_s10, 4  ;;  %s137_s9 = int_to_ptr.vmem [resolvable:$true] %s136_s9  ;;  %s127_s11 = int_to_ptr.vmem [resolvable:$true] %s126_s11 }
  0x29   :  { %156 = vmatmul.mubr.msk.f32.vlgmr.msra.gmra.mrb[0].mxu0 %vm41_vm1, %v39_v2  ;;  %s208_s1 = scalar_lea.vmem %s137_s9, 128  ;;  %p213_p3 = scmp.lt.s32.totalorder %s137_s9, %s137_s9 }
  0x2a   :  { %p209_p2 = scmp.ne.s32.totalorder %s137_s9, %s208_s1  ;;  %p214_p4 = scmp.lt.s32.totalorder %s208_s1, %s208_s1 }
  0x2c   :  { %p215_p5 = por %p214_p4, %p213_p3 }
  0x2e   :  { %p216_p6 = pnand %p215_p5, %p209_p2 }
  0xfc   :  { %v111_v3 = vpop.f32.mrb[0].mxu0 }
  0xfd   :  { %v115_v4 = vmul.f32 0.2, %v111_v3  ;;  %v157_v5 = vpop.f32.mrb[1].mxu0 }
  0xff   :  { %v116_v6 = vsub.f32 %v40_v1, %v115_v4  ;;  %118 = vst.msk [vmem:[#allocation8] sm:$0xff] %vm117_vm2, %v115_v4 }
 0x100   :  { %219 = shalt.err (!%p216_p6)
}
 0x101   :  { %s220_s14 = scalar_lea.hbm %s339_s3, 128 }
 0x102   :  { %p221_p7 = scmp.ne.s32.totalorder %s339_s3, %s220_s14  ;;  %p224_p8 = scmp.lt.u32.totalorder %s220_s14, %s339_s3 }
 0x104   :  { %p226_p9 = pnand %p224_p8, %p221_p7 }
 0x106   :  { %229 = shalt.err (!%p226_p9)
}
 0x107   :  { %139 = dma.vmem_to_hbm [thread:$0]  %s137_s9, 128, %s339_s3, [#allocation9]   ;;  %119 = vst.msk [vmem:[#allocation7] sm:$0xff] %vm117_vm2, %v116_v6 }
 0x108   :  { %s230_s21 = scalar_lea.vmem %s127_s11, 128  ;;  %p235_p11 = scmp.lt.s32.totalorder %s127_s11, %s127_s11 }
 0x109   :  { %p231_p10 = scmp.ne.s32.totalorder %s127_s11, %s230_s21  ;;  %p236_p12 = scmp.lt.s32.totalorder %s230_s21, %s230_s21 }
 0x10b   :  { %p237_p13 = por %p236_p12, %p235_p11 }
 0x10d   :  { %p238_p0 = pnand %p237_p13, %p231_p10 }
 0x10f   :  { %241 = shalt.err (!%p238_p0)
}
 0x110   :  { %s242_s24 = scalar_lea.hbm %s338_s2, 128 }
 0x111   :  { %p243_p1 = scmp.ne.s32.totalorder %s338_s2, %s242_s24  ;;  %p246_p2 = scmp.lt.u32.totalorder %s242_s24, %s338_s2 }
 0x113   :  { %p248_p3 = pnand %p246_p2, %p243_p1 }
 0x115   :  { %251 = shalt.err (!%p248_p3)
}
 0x116   :  { %129 = dma.vmem_to_hbm [thread:$0]  %s127_s11, 128, %s338_s2, [#allocation4]  }
 0x117   :  { %256 = dma.done.wait [#allocation4], 128  }
 0x118   :  { %257 = vsyncadd [#allocation4], 4294967168 }
 0x119   :  { %258 = dma.done.wait [#allocation9], 128  }
 0x11a   :  { %259 = vsyncadd [#allocation9], 4294967168 }
 0x11b   :  { %146 = vsyncpa [#allocation3], 1 }
 0x11c   :  { %147 = vsyncpa [#allocation6], 1 }
 0x11d   :  { %148 = vsyncpa [#allocation4], 1 }
 0x11e   :  { %149 = vsyncpa [#allocation9], 1 }

</bundles_post_ra>
